<compile_context>
chip_gen: v7x
topology: tpu7x:2x2x1
jax: 0.10.0
libtpu: 0.0.40
codegen_flags: <defaults>
</compile_context>

<pallas_src>
import functools

import jax
import jax.numpy as jnp
from jax.experimental import pallas as pl
from jax.experimental.pallas import tpu as pltpu


def _round_up(x, m):
    return (x + m - 1) // m * m


def _sublane_multiple(*dtypes):
    # Sublane granularity for the second-to-last block dim:
    # 8 for 4-byte, 16 for 2-byte, 32 for 1-byte dtypes.
    m = 8
    for dt in dtypes:
        m = max(m, 32 // jnp.dtype(dt).itemsize)
    return m


# Conservative VMEM budget for the pipelined tiles; fits under every
# generation's default scoped VMEM limit so no per-gen vmem_limit gating needed.
_VMEM_BUDGET = 12 * 1024 * 1024
_TARGET_OUT_BYTES = 2 << 20   # ~2 MiB of output per grid step
_MAX_TB = 8192


def _choose_block(batch, num_classes, embed_dim, logits_itemsize, emb_itemsize, sub):
    """Pick (batch_tile, padded_batch)."""
    b_al = _round_up(batch, sub)
    # Per-batch-row VMEM cost of the double-buffered logits + output tiles.
    # Both are lane-padded to 128 lanes inside VMEM regardless of C / E.
    row_bytes = 2 * (_round_up(num_classes, 128) * logits_itemsize
                     + _round_up(embed_dim, 128) * emb_itemsize)
    tb_vmem = max(sub, _VMEM_BUDGET // row_bytes)
    tb_tgt = max(512, _TARGET_OUT_BYTES // max(1, embed_dim * emb_itemsize))
    tb = min(tb_vmem, tb_tgt, _MAX_TB, b_al)
    tb = max(sub, (tb // sub) * sub)
    n_tiles = pl.cdiv(b_al, tb)
    # v7x has two TensorCores: keep the "parallel" grid axis >= 2 steps when the
    # batch is big enough so both cores get work (no-op on v5e/v6e).
    if n_tiles < 2 and b_al >= 2 * sub:
        n_tiles = 2
    # Re-derive the tile from the step count so batch padding stays < sub*n rows.
    tb = _round_up(pl.cdiv(b_al, n_tiles), sub)
    n_tiles = pl.cdiv(b_al, tb)
    return tb, tb * n_tiles


def _progression_embedding_kernel(logits_ref, emb_ref, out_ref, *, num_classes):
    # logits_ref : (TB, C)  native logits dtype
    # emb_ref    : (C, E)   native table dtype (whole table, VMEM resident)
    # out_ref    : (TB, E)  native table dtype
    logits = logits_ref[...].astype(jnp.float32)   # widening cast: argmax-exact
    tb, c = logits.shape

    # argmax over dim=1, first-occurrence tie-break (== torch.argmax).
    # softmax is omitted: strictly monotone, argmax unchanged.
    col = jax.lax.broadcasted_iota(jnp.int32, (tb, c), 1)
    row_max = jnp.max(logits, axis=1, keepdims=True)
    pred = jnp.min(jnp.where(logits >= row_max, col, c), axis=1, keepdims=True)
    # NB: an all-NaN row yields pred == C; the select chain then falls through to
    # class 0, matching torch's softmax->argmax result for that case.

    if num_classes <= 8:
        # Tiny C: bit-exact VPU select chain (no MXU, no gather).
        emb = emb_ref[...]
        out = jnp.broadcast_to(emb[0:1, :], out_ref.shape)
        for cls in range(1, num_classes):
            out = jnp.where(pred == cls, emb[cls:cls + 1, :], out)
    else:
        # Mid/large C: real row gather on the VMEM-resident table (replaces the
        # old one-hot f32 MXU matmul).
        # TODO(synk): for tables too large for VMEM, keep the table HBM-resident
        # (memory_space=pl.ANY) and do a pred-driven double-buffered DMA row gather.
        idx = jnp.minimum(pred[:, 0], num_classes - 1)
        out = jnp.take(emb_ref[...], idx, axis=0)

    out_ref[...] = out.astype(out_ref.dtype)


def progression_embedding(class_logits, embedding_table):
    """softmax -> argmax -> embedding lookup. Table and output keep native dtype.

    No per-call table prep is done (nothing to hoist into init); the table is
    consumed exactly as stored.
    """
    batch, num_classes = class_logits.shape
    c2, embed_dim = embedding_table.shape
    assert num_classes == c2, "logits / table class-count mismatch"

    out_dtype = embedding_table.dtype
    sub = _sublane_multiple(class_logits.dtype, out_dtype)
    tb, b_pad = _choose_block(
        batch, num_classes, embed_dim,
        jnp.dtype(class_logits.dtype).itemsize,
        jnp.dtype(out_dtype).itemsize,
        sub,
    )
    if b_pad != batch:
        class_logits = jnp.pad(class_logits, ((0, b_pad - batch), (0, 0)))

    grid = (b_pad // tb,)
    kernel = functools.partial(_progression_embedding_kernel, num_classes=num_classes)

    out = pl.pallas_call(
        kernel,
        out_shape=jax.ShapeDtypeStruct((b_pad, embed_dim), out_dtype),
        grid_spec=pltpu.PrefetchScalarGridSpec(
            num_scalar_prefetch=0,
            grid=grid,
            in_specs=[
                pl.BlockSpec((tb, num_classes), lambda i: (i, 0)),   # logits tile
                pl.BlockSpec((num_classes, embed_dim), lambda i: (0, 0)),  # table (never re-fetched)
            ],
            out_specs=pl.BlockSpec((tb, embed_dim), lambda i: (i, 0)),
        ),
        compiler_params=pltpu.CompilerParams(
            dimension_semantics=("parallel",)),
    )(class_logits, embedding_table)

    return out if b_pad == batch else out[:batch]


def _reference(class_logits, embedding_table):
    probs = jax.nn.softmax(class_logits.astype(jnp.float32), axis=1)
    pred = jnp.argmax(probs, axis=1)
    return embedding_table[pred]


if __name__ == "__main__":
    key = jax.random.PRNGKey(0)
    k_logits, k_emb, k_logits2, k_emb2 = jax.random.split(key, 4)

    # --- spec-sized case: num_classes=2, embed_dim=32, batch=8, f32 table -----
    num_classes, embed_dim, batch = 2, 32, 8
    embedding_table = jax.random.normal(
        k_emb, (num_classes, embed_dim), dtype=jnp.float32)
    class_logits = jax.random.normal(
        k_logits, (batch, num_classes), dtype=jnp.float32)

    out = jax.block_until_ready(progression_embedding(class_logits, embedding_table))
    ref = _reference(class_logits, embedding_table)
    assert out.shape == (batch, embed_dim)
    assert out.dtype == embedding_table.dtype
    assert jnp.array_equal(out, ref), "mismatch vs reference (f32, batch=8)"

    # --- multi-tile case: exercises >=2 grid steps + row padding/slicing ------
    batch2 = 200
    logits2 = jax.random.normal(k_logits2, (batch2, num_classes), dtype=jnp.float32)
    out2 = jax.block_until_ready(progression_embedding(logits2, embedding_table))
    ref2 = _reference(logits2, embedding_table)
    assert out2.shape == (batch2, embed_dim)
    assert jnp.array_equal(out2, ref2), "mismatch vs reference (f32, batch=200)"

    # --- native-dtype case: bf16 table stays bf16 end-to-end -------------------
    table_bf16 = jax.random.normal(
        k_emb2, (num_classes, embed_dim), dtype=jnp.float32).astype(jnp.bfloat16)
    out3 = jax.block_until_ready(progression_embedding(class_logits, table_bf16))
    ref3 = _reference(class_logits, table_bf16)
    assert out3.dtype == jnp.bfloat16
    assert jnp.array_equal(out3, ref3), "mismatch vs reference (bf16 table)"

    print("KERNEL_OK")
</pallas_src>

<mosaic_0001>
module attributes {stable_mosaic.version = 11 : i64} {
  func.func @_progression_embedding_kernel(%arg0: i32, %arg1: memref<8x2xf32, #tpu.memory_space<vmem>>, %arg2: memref<2x32xf32, #tpu.memory_space<vmem>>, %arg3: memref<8x32xf32, #tpu.memory_space<vmem>>) attributes {dimension_semantics = [#tpu.dimension_semantics<parallel>], iteration_bounds = array<i64: 1>, scalar_prefetch = 0 : i64, scratch_operands = 0 : i64, tpu.core_type = #tpu.core_type<tc>, window_params = [{transform_indices = @transform_0, window_bounds = array<i64: 8, 2>}, {pipeline_mode = #tpu.pipeline_mode<synchronous>, transform_indices = @transform_1, window_bounds = array<i64: 2, 32>}, {transform_indices = @transform_2, window_bounds = array<i64: 8, 32>}]} {
    %c0 = arith.constant 0 : index
    %c0_0 = arith.constant 0 : index
    %0 = vector.load %arg1[%c0, %c0_0] : memref<8x2xf32, #tpu.memory_space<vmem>>, vector<8x2xf32>
    %1 = tpu.iota {dimensions = array<i32: 1>} : vector<8x2xi32>
    %cst = arith.constant dense<0xFF800000> : vector<8xf32>
    %2 = vector.multi_reduction <maximumf>, %0, %cst [1] : vector<8x2xf32> to vector<8xf32>
    %3 = vector.shape_cast %2 : vector<8xf32> to vector<8x1xf32>
    %4 = vector.broadcast %3 : vector<8x1xf32> to vector<8x2xf32>
    %5 = arith.cmpf oge, %0, %4 : vector<8x2xf32>
    %c2_i32 = arith.constant 2 : i32
    %6 = vector.broadcast %c2_i32 : i32 to vector<8x2xi32>
    %7 = arith.select %5, %1, %6 : vector<8x2xi1>, vector<8x2xi32>
    %cst_1 = arith.constant dense<2147483647> : vector<8xi32>
    %8 = vector.multi_reduction <minsi>, %7, %cst_1 [1] : vector<8x2xi32> to vector<8xi32>
    %9 = vector.shape_cast %8 : vector<8xi32> to vector<8x1xi32>
    %c0_2 = arith.constant 0 : index
    %c0_3 = arith.constant 0 : index
    %10 = vector.load %arg2[%c0_2, %c0_3] : memref<2x32xf32, #tpu.memory_space<vmem>>, vector<2x32xf32>
    %11 = vector.extract_strided_slice %10 {offsets = [0, 0], sizes = [1, 32], strides = [1, 1]} : vector<2x32xf32> to vector<1x32xf32>
    %12 = vector.shape_cast %11 : vector<1x32xf32> to vector<1x32xf32>
    %13 = vector.broadcast %12 : vector<1x32xf32> to vector<8x32xf32>
    %c1_i32 = arith.constant 1 : i32
    %14 = vector.broadcast %c1_i32 : i32 to vector<8x1xi32>
    %15 = arith.cmpi eq, %9, %14 : vector<8x1xi32>
    %16 = vector.extract_strided_slice %10 {offsets = [1, 0], sizes = [1, 32], strides = [1, 1]} : vector<2x32xf32> to vector<1x32xf32>
    %17 = vector.shape_cast %15 : vector<8x1xi1> to vector<8x1xi1>
    %18 = vector.broadcast %17 : vector<8x1xi1> to vector<8x32xi1>
    %19 = vector.shape_cast %16 : vector<1x32xf32> to vector<1x32xf32>
    %20 = vector.broadcast %19 : vector<1x32xf32> to vector<8x32xf32>
    %21 = arith.select %18, %20, %13 : vector<8x32xi1>, vector<8x32xf32>
    %c0_4 = arith.constant 0 : index
    %c0_5 = arith.constant 0 : index
    %22 = vector.load %arg3[%c0_4, %c0_5] : memref<8x32xf32, #tpu.memory_space<vmem>>, vector<8x32xf32>
    tpu.vector_store %arg3[%c0_4, %c0_5], %21 {strides = array<i32>} : memref<8x32xf32, #tpu.memory_space<vmem>>, vector<8x32xf32>,
    return
  }
  func.func @transform_0(%arg0: i32) -> (i32, i32) {
    %c0_i32 = arith.constant 0 : i32
    %c0_i32_0 = arith.constant 0 : i32
    return %arg0, %c0_i32 : i32, i32
  }
  func.func @transform_1(%arg0: i32) -> (i32, i32) {
    %c0_i32 = arith.constant 0 : i32
    %c0_i32_0 = arith.constant 0 : i32
    %c0_i32_1 = arith.constant 0 : i32
    return %c0_i32, %c0_i32_0 : i32, i32
  }
  func.func @transform_2(%arg0: i32) -> (i32, i32) {
    %c0_i32 = arith.constant 0 : i32
    %c0_i32_0 = arith.constant 0 : i32
    return %arg0, %c0_i32 : i32, i32
  }
}

</mosaic_0001>

<bundles_post_ra>
// kernel: tpu_custom_call.1
= control target key start
LH: loop header
LB: loop body
LE: loop exit
PB: predicated region body
PF: predicated region fallthrough
CT: control target
= control target key end

     0   :  { %vm15_vm0 = vcmask 15360   ;;  %s124_s0 = inlined_call_operand.vmem [shape: f32[8,2], index: 0, kind: input, shape index: {}]   ;;  %s125_s1 = inlined_call_operand.vmem [shape: f32[2,32], index: 1, kind: input, shape index: {}]   ;;  %s126_s2 = inlined_call_operand.hbm [shape: f32[8,32], index: 2, kind: output, shape index: {}]  }
   0x1   :  { %v12_v0 = vld [vmem:[%s124_s0] sm:$0xff] }
   0x2   :  { %7 = vsyncpa [#allocation3], 0  ;;  %v16_v1 = vsel %vm15_vm0, %v12_v0, -inf  ;;  %v13_v2 = vlaneseq  ;;  %v36_v17 = vld [vmem:[%s125_s1] sm:$0x3]  ;;  %s90_s12 = smov [#allocation2]  }
   0x3   :  { %17 = vmax.xlane.f32.xlu0 %v16_v1  ;;  %s57_s13 = sshll.u32 %s90_s12, 4  ;;  %vm49_vm3 = vcmask 261120   ;;  %s58_s13 = int_to_ptr.vmem [resolvable:$true] %s57_s13 }
   0x4   :  { %v14_v3 = vand.u32 127, %v13_v2  ;;  %v38_v13 = vshrl.u32 %v13_v2, 7  ;;  %s66_s14 = scalar_lea.vmem %s58_s13, 128  ;;  %p71_p1 = scmp.lt.s32.totalorder %s58_s13, %s58_s13 }
   0x5   :  { %p67_p0 = scmp.ne.s32.totalorder %s58_s13, %s66_s14  ;;  %p72_p2 = scmp.lt.s32.totalorder %s66_s14, %s66_s14 }
   0x6   :  { %v39_v15 = vsub.s32 0, %v38_v13  ;;  %v46_v16 = vsub.s32 1, %v38_v13 }
   0x7   :  { %p73_p3 = por %p72_p2, %p71_p1 }
   0x8   :  { %v40_v21 = vrot.slane %v36_v17, %v39_v15  ;;  %v47_v22 = vrot.slane %v36_v17, %v46_v16 }
   0x9   :  { %p74_p4 = pnand %p73_p3, %p67_p0 }
  0x90   :  { %v18_v4 = vpop.xlane.xlu0 %17 }
  0x91   :  { %vm19_vm1 = vcmp.ge.f32.partialorder %v12_v0, %v18_v4 }
  0x92   :  { %v20_v5 = vsel %vm19_vm1, %v14_v3, 2 }
  0x93   :  { %v21_v6 = vsel %vm15_vm0, %v20_v5, 2147483647 }
  0x94   :  { %v23_v7 = vshra.s32 %v21_v6, 16  ;;  %v22_v9 = vand.u32 65535, %v21_v6 }
  0x96   :  { %v25_v8 = vcvt.s32.f32 %v23_v7  ;;  %v24_v11 = vcvt.s32.f32 %v22_v9 }
  0x98   :  { %26 = vmin.xlane.f32.xlu0 %v25_v8 }
 0x125   :  { %v27_v10 = vpop.xlane.xlu0 %26 }
 0x126   :  { %vm28_vm2 = vcmp.eq.f32.partialorder %v25_v8, %v27_v10  ;;  %v33_v14 = vcvt.f32.s32 %v27_v10 }
 0x127   :  { %v29_v12 = vsel %vm28_vm2, %v24_v11, inf }
 0x128   :  { %30 = vmin.xlane.f32.xlu1 %v29_v12  ;;  %v34_v19 = vshll.u32 %v33_v14, 16 }
 0x1b5   :  { %v31_v18 = vpop.xlane.xlu1 %30 }
 0x1b6   :  { %v32_v20 = vcvt.f32.s32 %v31_v18 }
 0x1b8   :  { %v35_v23 = vadd.s32 %v34_v19, %v32_v20 }
 0x1ba   :  { %vm41_vm4 = vcmp.eq.s32.totalorder %v35_v23, 1 }
 0x1bb   :  { %v48_v24 = vsel %vm41_vm4, %v47_v22, %v40_v21 }
 0x1bc   :  { %50 = vst.msk [vmem:[#allocation2] sm:$0xff] %vm49_vm3, %v48_v24 }
 0x1bd   :  { %77 = shalt.err (!%p74_p4)
}
 0x1be   :  { %s78_s16 = scalar_lea.hbm %s126_s2, 128 }
 0x1bf   :  { %p79_p5 = scmp.ne.s32.totalorder %s126_s2, %s78_s16  ;;  %p82_p6 = scmp.lt.u32.totalorder %s78_s16, %s126_s2 }
 0x1c1   :  { %p84_p7 = pnand %p82_p6, %p79_p5 }
 0x1c3   :  { %87 = shalt.err (!%p84_p7)
}
 0x1c4   :  { %60 = dma.vmem_to_hbm [thread:$0]  %s58_s13, 128, %s126_s2, [#allocation3]  }
 0x1c5   :  { %88 = dma.done.wait [#allocation3], 128  }
 0x1c6   :  { %89 = vsyncadd [#allocation3], 4294967168 }
 0x1c7   :  { %64 = vsyncpa [#allocation3], 1 }

</bundles_post_ra>
